<compile_context>
chip_gen: v7x
topology: tpu7x:2x2x1
jax: 0.10.0
libtpu: 0.0.40
codegen_flags: <defaults>
</compile_context>

<pallas_src>
import jax
import jax.numpy as jnp
from jax.experimental import pallas as pl
from jax.experimental.pallas import tpu as pltpu


def _rev2fwd_kernel(x_ref, xd_ref, o_ref, acc_ref):
    # x_ref : (1, 1, TF)   grad_output feature tile for batch element n
    # xd_ref: (1, D, TF)   stored directional derivatives for same n / tile
    # o_ref : (1, 1, D)    per-batch-element partial gradient (f32)
    # acc_ref: (1, D) f32  accumulator across feature tiles
    f = pl.program_id(1)

    @pl.when(f == 0)
    def _():
        acc_ref[...] = jnp.zeros_like(acc_ref)

    x = x_ref[...].astype(jnp.float32)    # (1, 1, TF)
    xd = xd_ref[...].astype(jnp.float32)  # (1, D, TF)
    # broadcast x over the D directions, reduce over the lane (feature) axis
    acc_ref[...] += jnp.sum(xd * x, axis=-1)  # (1, D)

    @pl.when(f == pl.num_programs(1) - 1)
    def _():
        o_ref[...] = acc_ref[...].reshape(o_ref.shape).astype(o_ref.dtype)


def rev2fwd_forward(grad_output, input_d, *, tile_f=None):
    """
    Forward pass of Rev2Fwd.__Func__.

    grad_output: (N, C, H, W)   tensor entering Rev2Fwd.forward
    input_d    : (N*D, C, H, W) stashed directional derivatives (D stacked on batch)
    returns    : (D,) per-direction gradient, flattened (matches PyTorch module)
    """
    N, C, H, W = grad_output.shape
    ND = input_d.shape[0]
    assert ND % N == 0, "derivative batch must be a multiple of primal batch"
    D = ND // N
    F = C * H * W

    out_dtype = jnp.result_type(grad_output.dtype, input_d.dtype)
    itemsize = jnp.dtype(input_d.dtype).itemsize

    # Lane-dense flattened layouts (contiguous reshapes, free).
    x = grad_output.reshape(N, 1, F)
    xd = input_d.reshape(N, D, F)

    # Feature tile: multiple of 128, dominant xd buffer capped at ~2 MiB.
    f_128 = ((F + 127) // 128) * 128
    if tile_f is None:
        target_bytes = 2 << 20
        tile_f = max(128, (target_bytes // max(1, D * itemsize)) // 128 * 128)
    tile_f = max(128, (int(tile_f) // 128) * 128)
    tile_f = min(tile_f, f_128)

    f_pad = pl.cdiv(F, tile_f) * tile_f
    if f_pad != F:
        # zero padding contributes nothing to the reduction
        x = jnp.pad(x, ((0, 0), (0, 0), (0, f_pad - F)))
        xd = jnp.pad(xd, ((0, 0), (0, 0), (0, f_pad - F)))
    n_f = f_pad // tile_f

    partials = pl.pallas_call(
        _rev2fwd_kernel,
        out_shape=jax.ShapeDtypeStruct((N, 1, D), jnp.float32),
        grid_spec=pltpu.PrefetchScalarGridSpec(
            num_scalar_prefetch=0,
            grid=(N, n_f),
            in_specs=[
                pl.BlockSpec((1, 1, tile_f), lambda n, f: (n, 0, f)),
                pl.BlockSpec((1, D, tile_f), lambda n, f: (n, 0, f)),
            ],
            out_specs=pl.BlockSpec((1, 1, D), lambda n, f: (n, 0, 0)),
            scratch_shapes=[pltpu.VMEM((1, D), jnp.float32)],
        ),
        compiler_params=pltpu.CompilerParams(
            dimension_semantics=("parallel", "arbitrary"),
            vmem_limit_bytes=32 * 1024 * 1024,
        ),
    )(x, xd)

    # tiny (N, D) -> (D,) reduction in plain JAX; keeps N a parallel grid axis
    grad_input = jnp.sum(partials[:, 0, :], axis=0).astype(out_dtype)
    return grad_input.reshape(-1)


if __name__ == "__main__":
    key = jax.random.PRNGKey(0)
    k1, k2 = jax.random.split(key)

    N, C, H, W = 2, 4, 16, 16
    D = 3  # number of forward-mode directional derivatives

    x = jax.random.normal(k1, (N, C, H, W), dtype=jnp.float32)           # grad_output
    input_d = jax.random.normal(k2, (N * D, C, H, W), dtype=jnp.float32)  # stashed derivatives

    out = jax.block_until_ready(rev2fwd_forward(x, input_d))

    # pure-JAX reference mirroring the PyTorch module
    ref = jnp.sum(
        input_d.reshape(N, D, C, H, W) * x[:, None], axis=(0, 2, 3, 4)
    ).reshape(-1)

    assert out.shape == (D,), out.shape
    assert jnp.allclose(out, ref, rtol=1e-5, atol=1e-4), (out, ref)

    # exercise the multi-feature-tile accumulation path as well
    out2 = jax.block_until_ready(rev2fwd_forward(x, input_d, tile_f=256))
    assert jnp.allclose(out2, ref, rtol=1e-5, atol=1e-4), (out2, ref)

    print("KERNEL_OK")
</pallas_src>

<mosaic_0001>
module attributes {stable_mosaic.version = 11 : i64} {
  func.func @_rev2fwd_kernel(%arg0: i32, %arg1: i32, %arg2: memref<1x1x1024xf32, #tpu.memory_space<vmem>>, %arg3: memref<1x3x1024xf32, #tpu.memory_space<vmem>>, %arg4: memref<1x1x3xf32, #tpu.memory_space<vmem>>, %arg5: memref<1x3xf32, #tpu.memory_space<vmem>>) attributes {dimension_semantics = [#tpu.dimension_semantics<parallel>, #tpu.dimension_semantics<arbitrary>], iteration_bounds = array<i64: 2, 1>, scalar_prefetch = 0 : i64, scratch_operands = 1 : i64, tpu.core_type = #tpu.core_type<tc>, window_params = [{transform_indices = @transform_0, window_bounds = array<i64: 1, 1, 1024>}, {transform_indices = @transform_1, window_bounds = array<i64: 1, 3, 1024>}, {transform_indices = @transform_2, window_bounds = array<i64: 1, 1, 3>}]} {
    %c0_i32 = arith.constant 0 : i32
    %0 = arith.cmpi eq, %arg1, %c0_i32 : i32
    %1 = arith.extui %0 : i1 to i32
    %c0_i32_0 = arith.constant 0 : i32
    %2 = arith.cmpi ne, %1, %c0_i32_0 : i32
    scf.if %2 {
      %cst_12 = arith.constant 0.000000e+00 : f32
      %14 = vector.broadcast %cst_12 : f32 to vector<1x3xf32>
      %c0_13 = arith.constant 0 : index
      %c0_14 = arith.constant 0 : index
      %15 = vector.load %arg5[%c0_13, %c0_14] : memref<1x3xf32, #tpu.memory_space<vmem>>, vector<1x3xf32>
      tpu.vector_store %arg5[%c0_13, %c0_14], %14 {strides = array<i32>} : memref<1x3xf32, #tpu.memory_space<vmem>>, vector<1x3xf32>,
    } else {
    }
    %c0 = arith.constant 0 : index
    %c0_1 = arith.constant 0 : index
    %c0_2 = arith.constant 0 : index
    %3 = vector.load %arg2[%c0, %c0_1, %c0_2] : memref<1x1x1024xf32, #tpu.memory_space<vmem>>, vector<1x1x1024xf32>
    %c0_3 = arith.constant 0 : index
    %c0_4 = arith.constant 0 : index
    %c0_5 = arith.constant 0 : index
    %4 = vector.load %arg3[%c0_3, %c0_4, %c0_5] : memref<1x3x1024xf32, #tpu.memory_space<vmem>>, vector<1x3x1024xf32>
    %c0_6 = arith.constant 0 : index
    %c0_7 = arith.constant 0 : index
    %5 = vector.load %arg5[%c0_6, %c0_7] : memref<1x3xf32, #tpu.memory_space<vmem>>, vector<1x3xf32>
    %6 = vector.broadcast %3 : vector<1x1x1024xf32> to vector<1x3x1024xf32>
    %7 = arith.mulf %4, %6 : vector<1x3x1024xf32>
    %cst = arith.constant dense<0.000000e+00> : vector<1x3xf32>
    %8 = vector.multi_reduction <add>, %7, %cst [2] : vector<1x3x1024xf32> to vector<1x3xf32>
    %9 = arith.addf %5, %8 : vector<1x3xf32>
    %c0_8 = arith.constant 0 : index
    %c0_9 = arith.constant 0 : index
    %10 = vector.load %arg5[%c0_8, %c0_9] : memref<1x3xf32, #tpu.memory_space<vmem>>, vector<1x3xf32>
    tpu.vector_store %arg5[%c0_8, %c0_9], %9 {strides = array<i32>} : memref<1x3xf32, #tpu.memory_space<vmem>>, vector<1x3xf32>,
    %c0_i32_10 = arith.constant 0 : i32
    %11 = arith.cmpi eq, %arg1, %c0_i32_10 : i32
    %12 = arith.extui %11 : i1 to i32
    %c0_i32_11 = arith.constant 0 : i32
    %13 = arith.cmpi ne, %12, %c0_i32_11 : i32
    scf.if %13 {
      %c0_12 = arith.constant 0 : index
      %c0_13 = arith.constant 0 : index
      %14 = vector.load %arg5[%c0_12, %c0_13] : memref<1x3xf32, #tpu.memory_space<vmem>>, vector<1x3xf32>
      %15 = vector.shape_cast %14 : vector<1x3xf32> to vector<1x1x3xf32>
      %c0_14 = arith.constant 0 : index
      %c0_15 = arith.constant 0 : index
      %c0_16 = arith.constant 0 : index
      %16 = vector.load %arg4[%c0_14, %c0_15, %c0_16] : memref<1x1x3xf32, #tpu.memory_space<vmem>>, vector<1x1x3xf32>
      tpu.vector_store %arg4[%c0_14, %c0_15, %c0_16], %15 {strides = array<i32>} : memref<1x1x3xf32, #tpu.memory_space<vmem>>, vector<1x1x3xf32>,
    } else {
    }
    return
  }
  func.func @transform_0(%arg0: i32, %arg1: i32) -> (i32, i32, i32) {
    %c0_i32 = arith.constant 0 : i32
    %c0_i32_0 = arith.constant 0 : i32
    return %arg0, %c0_i32, %arg1 : i32, i32, i32
  }
  func.func @transform_1(%arg0: i32, %arg1: i32) -> (i32, i32, i32) {
    %c0_i32 = arith.constant 0 : i32
    %c0_i32_0 = arith.constant 0 : i32
    return %arg0, %c0_i32, %arg1 : i32, i32, i32
  }
  func.func @transform_2(%arg0: i32, %arg1: i32) -> (i32, i32, i32) {
    %c0_i32 = arith.constant 0 : i32
    %c0_i32_0 = arith.constant 0 : i32
    %c0_i32_1 = arith.constant 0 : i32
    return %arg0, %c0_i32, %c0_i32_0 : i32, i32, i32
  }
}

</mosaic_0001>

<bundles_post_ra>
// kernel: tpu_custom_call.1
= control target key start
LH: loop header
LB: loop body
LE: loop exit
PB: predicated region body
PF: predicated region fallthrough
CT: control target
= control target key end

     0   :  { %7 = vsyncpa [#allocation4], 0  ;;  %s762_s0 = inlined_call_operand.vmem [shape: f32[2,1,1024], index: 0, kind: input, shape index: {}]   ;;  %s763_s1 = inlined_call_operand.vmem [shape: f32[2,3,1024], index: 1, kind: input, shape index: {}]   ;;  %s764_s2 = inlined_call_operand.hbm [shape: f32[2,1,3], index: 2, kind: output, shape index: {}]  }
   0x1   :  { %9 = vsyncpa [#allocation4 + $0x1], 0  ;;  %s624_s9 = smov 0   ;;  %s626_s10 = smov 0  }
   0x2   :  { %s628_s11 = smov 0   ;;  %s630_s12 = smov 0  }
   0x3   :  { %s632_s13 = smov 0   ;;  %s634_s14 = smov 0  }
   0x4 LB: > { %s454_s15 = sadd.s32 4294967295, %s603_s14   ;;  %s455_s16 = sadd.s32 4294967294, %s603_s14   ;;  %s603_s14 = sphi %s634_s14, %s15_s14   ;;  %s599_s13 = sphi %s632_s13, %s771_s13   ;;  %s595_s12 = sphi %s630_s12, %s770_s12   ;;  %s591_s11 = sphi %s628_s11, %s769_s11   ;;  %s587_s10 = sphi %s626_s10, %s768_s10   ;;  %s583_s9 = sphi %s624_s9, %s767_s9  }
   0x5   : > { %s27_s17 = sadd.s32 1, %s599_s13  ;;  %s90_s18 = sadd.s32 1, %s591_s11 }
   0x6   : > { %p29_p0 = scmp.ge.s32.totalorder %s27_s17, 2  ;;  %p100_p1 = scmp.ne.s32.totalorder %s591_s11, %s587_s10 }
   0x7   : > { %p101_p2 = scmp.eq.s32.totalorder %s454_s15, 1  ;;  %p106_p3 = scmp.ne.s32.totalorder %s587_s10, %s583_s9 }
   0x8   : > { %s773_s17 = smov (%p29_p0, %s27_s17), 0  ;;  %p107_p5 = scmp.eq.s32.totalorder %s455_s16, 1 }
   0x9   : > { %p664_p4 = por %p101_p2, %p100_p1  ;;  %s87_s20 = ssub.s32 %s599_s13, %s773_s17 }
   0xa   : > { %p458_p6 = scmp.ge.s32.totalorder %s603_s14, 1  ;;  %p88_p7 = scmp.eq.s32.totalorder %s87_s20, 0 }
   0xb   : > { %p671_p8 = por %p107_p5, %p106_p3  ;;  %p150_p9 = scmp.lt.s32.totalorder %s603_s14, 3 }
   0xc   : > { %s677_s22 = scalar_select %p88_p7, %s591_s11, %s90_s18  }
   0xd   : > { %p151_p10 = pnand %p458_p6, %p150_p9 }
   0xe   : > { %p184_p11 = scmp.lt.s32.totalorder (!%p151_p10), %s595_s12, 1  ;;  %v215_v0 = vlaneseq (!%p151_p10)  ;;  %vm271_vm0 = vcmask (!%p151_p10), 1042432   ;;  %v605_v50 = vmov (!%p151_p10), 0   ;;  %v606_v53 = vmov (!%p151_p10), 1966171168   ;;  %s181_s4 = sand.u32 (!%p151_p10), 1, %s587_s10  }
   0xf   : > { %154 = sbr.rel (%p151_p10) target bundleno = 360 (0x168), region = 28  ;;  %524 = vset.pattern.permute.xlu0 (!%p151_p10), %v605_v50  ;;  %v304_v54 = vunpack.c.l.s4 (!%p151_p10), %v606_v53  ;;  %vm206_vm1 = vcmask (!%p151_p10), 16384   ;;  %s462_s5 = sshll.u32 (!%p151_p10), %s595_s12, 4 }
  0x10   : > { %v681_v1 = vshrl.u32 (!%p151_p10), %v215_v0, 7  ;;  %v329_v51 = vand.u32 (!%p151_p10), 127, %v215_v0  ;;  %v607_v0 = vmov (!%p151_p10), 0.0   ;;  %s182_s6 = scalar_lea.vmem (!%p151_p10), [#allocation3], %s181_s4  ;;  %s714_s16 = scalar_lea.hbm (!%p151_p10), %s764_s2, %s462_s5 }
  0x11   : > { %v305_v55 = vunpack.c.0.s8 (!%p151_p10), %v304_v54  ;;  %207 = vst.msk [vmem:[#allocation2] sm:$0x1] (!%p151_p10), %vm206_vm1, %v607_v0  ;;  %s370_s7 = sshll.u32 (!%p151_p10), %s182_s6, 4  ;;  %s358_s18 = scalar_lea.sflag (!%p151_p10), [#allocation4], %s181_s4  ;;  %s716_s7 = int_to_ptr.vmem [resolvable:$true] %s370_s7 }
  0x12   : > { %v217_v2 = vsub.s32 (!%p151_p10), 0, %v681_v1  ;;  %v221_v3 = vsub.s32 (!%p151_p10), 1, %v681_v1  ;;  %v225_v4 = vsub.s32 (!%p151_p10), 2, %v681_v1  ;;  %v229_v5 = vsub.s32 (!%p151_p10), 3, %v681_v1  ;;  %s525_s20 = scalar_lea.vmem (!%p151_p10), %s716_s7, 16 }
  0x13   : > { %v233_v6 = vsub.s32 (!%p151_p10), 4, %v681_v1  ;;  %v237_v7 = vsub.s32 (!%p151_p10), 5, %v681_v1  ;;  %v241_v8 = vsub.s32 (!%p151_p10), 6, %v681_v1  ;;  %v245_v9 = vsub.s32 (!%p151_p10), 7, %v681_v1  ;;  %p526_p12 = scmp.ne.s32.totalorder (!%p151_p10), %s716_s7, %s525_s20 }
  0x14   : > { %v332_v52 = vsub.s32 (!%p151_p10), %v329_v51, %v681_v1  ;;  %v308_v57 = vsub.s32 (!%p151_p10), %v305_v55, %v681_v1 }
  0x15   : > { %p527_p13 = pnand (!%p151_p10), %p526_p12, %p664_p4 }
  0x16   : > { %s185_s23 = scalar_select %p184_p11, %s595_s12, 1 }
  0x17   : > { %p528_p0 = pneg %p527_p13  ;;  %s608_s12 = smov [#allocation3]  }
  0x18   : > { %s459_s24 = sshll.u32 %s185_s23, 3  ;;  %s465_s25 = sshll.u32 %s185_s23, 5  ;;  %v213_v1 = vld [vmem:[#allocation2] sm:$0x1] }
  0x19   : > { %s190_s28 = scalar_lea.vmem %s762_s0, %s459_s24  ;;  %s200_s3 = scalar_lea.vmem %s763_s1, %s465_s25 }
  0x1a   : > { %v208_v10 = vld [vmem:[%s190_s28] sm:$0xff]  ;;  %v210_v16 = vld [vmem:[%s200_s3 + $0x8] sm:$0x77]  ;;  %v211_v23 = vld [vmem:[%s200_s3 + $0x10] sm:$0x77]  ;;  %s529_s23 = sshll.u32 %s608_s12, 4  ;;  %s530_s23 = int_to_ptr.vmem [resolvable:$false] %s529_s23 }
  0x1b   : > { %v218_v11 = vrot.slane %v208_v10, %v217_v2  ;;  %v222_v12 = vrot.slane %v208_v10, %v221_v3  ;;  %v226_v13 = vrot.slane %v208_v10, %v225_v4  ;;  %v230_v14 = vrot.slane %v208_v10, %v229_v5  ;;  %v209_v15 = vld [vmem:[%s200_s3] sm:$0x77]  ;;  %v212_v32 = vld [vmem:[%s200_s3 + $0x18] sm:$0x77]  ;;  %s531_s24 = scalar_lea.vmem %s530_s23, 32  ;;  %p532_p1 = scmp.lt.s32.totalorder %s716_s7, %s530_s23 }
  0x1c   : > { %v234_v17 = vrot.slane %v208_v10, %v233_v6  ;;  %v238_v18 = vrot.slane %v208_v10, %v237_v7  ;;  %v242_v19 = vrot.slane %v208_v10, %v241_v8  ;;  %v246_v20 = vrot.slane %v208_v10, %v245_v9  ;;  %p533_p2 = scmp.lt.s32.totalorder %s531_s24, %s525_s20 }
  0x1d   : > { %v247_v21 = vcombine.low %v218_v11, %v222_v12  ;;  %v248_v22 = vcombine.low %v226_v13, %v230_v14 }
  0x1e   : > { %v249_v24 = vcombine.low %v234_v17, %v238_v18  ;;  %v250_v27 = vcombine.low %v242_v19, %v246_v20  ;;  %p534_p3 = por %p533_p2, %p532_p1 }
  0x1f   : > { %v255_v25 = vmul.f32 %v247_v21, %v209_v15  ;;  %v256_v26 = vmul.f32 %v248_v22, %v210_v16 }
  0x20   : > { %v257_v28 = vmul.f32 %v249_v24, %v211_v23  ;;  %v258_v36 = vmul.f32 %v250_v27, %v212_v32  ;;  %p535_p5 = pnand %p534_p3, %p528_p0 }
  0x21   : > { %v263_v29 = vcombine.high %v255_v25, %v255_v25  ;;  %v264_v30 = vcombine.high %v256_v26, %v256_v26  ;;  %v272_v31 = vsel %vm271_vm0, %v255_v25, 0.0  ;;  %v275_v34 = vsel %vm271_vm0, %v256_v26, 0.0 }
  0x22   : > { %v265_v37 = vcombine.high %v257_v28, %v257_v28  ;;  %v279_v40 = vsel %vm271_vm0, %v257_v28, 0.0  ;;  %v266_v42 = vcombine.high %v258_v36, %v258_v36  ;;  %v283_v45 = vsel %vm271_vm0, %v258_v36, 0.0 }
  0x23   : > { %v273_v33 = vsel %vm271_vm0, %v263_v29, 0.0  ;;  %v277_v38 = vsel %vm271_vm0, %v264_v30, 0.0 }
  0x24   : > { %v274_v35 = vadd.f32 %v273_v33, %v272_v31  ;;  %v281_v43 = vsel %vm271_vm0, %v265_v37, 0.0  ;;  %v285_v47 = vsel %vm271_vm0, %v266_v42, 0.0 }
  0x26   : > { %v276_v39 = vadd.f32 %v275_v34, %v274_v35 }
  0x28   : > { %v278_v41 = vadd.f32 %v277_v38, %v276_v39 }
  0x2a   : > { %v280_v44 = vadd.f32 %v279_v40, %v278_v41 }
  0x2c   : > { %v282_v46 = vadd.f32 %v281_v43, %v280_v44 }
  0x2e   : > { %v284_v48 = vadd.f32 %v283_v45, %v282_v46 }
  0x30   : > { %v286_v49 = vadd.f32 %v285_v47, %v284_v48 }
  0x32   : > { %287 = vadd.xlane.f32.xlu0 %v286_v49 }
  0xbf   : > { %v288_v56 = vpop.xlane.xlu0 %287 }
  0xc0   : > { %v293_v58 = vrot.slane %v288_v56, %v217_v2  ;;  %v297_v59 = vrot.slane %v288_v56, %v221_v3  ;;  %v301_v60 = vrot.slane %v288_v56, %v225_v4 }
  0xc2   : > { %v302_v61 = vcombine.low %v293_v58, %v297_v59  ;;  %v316_v63 = vrot.slane %v301_v60, %v308_v57 }
  0xc4   : > { %v309_v62 = vrot.slane %v302_v61, %v308_v57 }
  0xc6   : > { %v317_v5 = vcombine.low %v309_v62, %v316_v63 }
  0xc8   : > { %v324_v6 = vrot.slane %v317_v5, %v308_v57 }
  0xca   : > { %326 = vperm.xlu0 %524, %v324_v6  }
 0x149   : > { %v327_v7 = vpop.permute.xlu0 %326 }
 0x14a   : > { %v333_v8 = vrot.slane %v327_v7, %v332_v52 }
 0x14c   : > { %v340_v9 = vrot.slane %v333_v8, %v308_v57 }
 0x14e   : > { %v347_v2 = vrot.slane %v340_v9, %v308_v57 }
 0x150   : > { %v349_v3 = vadd.f32 %v347_v2, %v213_v1 }
 0x152   : > { %351 = vst.msk [vmem:[#allocation2] sm:$0x1] %vm206_vm1, %v349_v3 }
 0x159   : > { %v355_v4 = vld [vmem:[#allocation2] sm:$0x1] }
 0x15a   : > { %356 = vst.msk [vmem:[%s182_s6] sm:$0x1] %vm206_vm1, %v355_v4 }
 0x15b   : > { %538 = shalt.err (!%p535_p5)
}
 0x15c   : > { %s539_s25 = scalar_lea.hbm %s714_s16, 16  ;;  %s543_s28 = scalar_lea.hbm %s764_s2, 32 }
 0x15d   : > { %p540_p6 = scmp.ne.s32.totalorder %s714_s16, %s539_s25  ;;  %p544_p10 = scmp.lt.u32.totalorder %s714_s16, %s764_s2 }
 0x15e   : > { %p545_p11 = scmp.lt.u32.totalorder %s543_s28, %s539_s25  ;;  %p547_p13 = scmp.lt.u32.totalorder %s539_s25, %s714_s16 }
 0x15f   : > { %p541_p7 = pnand %p540_p6, %p664_p4 }
 0x160   : > { %p546_p12 = por %p545_p11, %p544_p10 }
 0x161   : > { %p542_p9 = pneg %p541_p7 }
 0x162   : > { %p548_p0 = por %p547_p13, %p546_p12 }
 0x164   : > { %p549_p1 = pnand %p548_p0, %p542_p9 }
 0x166   : > { %552 = shalt.err (!%p549_p1)
}
 0x167   : > { %466 = dma.vmem_to_hbm [thread:$0]  (%p664_p4), %s716_s7, 16, %s714_s16, %s358_s18  }
 0x168 PF: > { %p472_p2 = scmp.ge.s32.totalorder %s603_s14, 2  ;;  %s382_s3 = sand.u32 1, %s583_s9  }
 0x169   : > { %s383_s4 = scalar_lea.sflag [#allocation4], %s382_s3 }
 0x16a   : > { %p469_p3 = pnand %p472_p2, %p671_p8 }
 0x16c   : > { %578 = dma.done.wait (!%p469_p3), %s383_s4, 16  }
 0x16d   : > { %580 = vsyncadd (!%p469_p3), %s383_s4, 4294967280  ;;  %s15_s14 = sadd.s32 1, %s603_s14   ;;  %s767_s9 = smov %s587_s10 }
 0x16e   : > { %p12_p5 = scmp.ge.s32.totalorder %s15_s14, 4   ;;  %s768_s10 = smov %s591_s11 }
 0x16f   : > { %s769_s11 = smov %s677_s22  ;;  %s770_s12 = smov %s599_s13 }
 0x170   : > { %s771_s13 = smov %s773_s17  ;;  %14 = sbr.rel (!%p12_p5) target bundleno = 4 (0x4), region = 74 }
 0x177   :  { %387 = vsyncpa [#allocation4], 1 }
 0x178   :  { %389 = vsyncpa [#allocation4 + $0x1], 1 }

</bundles_post_ra>
